<compile_context>
chip_gen: v7x
topology: tpu7x:2x2x1
jax: 0.10.0
libtpu: 0.0.40
codegen_flags: <defaults>
</compile_context>

<pallas_src>
import functools
import math

import jax
import jax.numpy as jnp
from jax.experimental import pallas as pl
from jax.experimental.pallas import tpu as pltpu


def _cdiv(a, b):
    return -(-a // b)


def _round_up(x, m):
    return _cdiv(x, m) * m


# ---------------------------------------------------------------------------
# Kernel
# ---------------------------------------------------------------------------
def _v_critic_kernel(obsT_ref, idT_ref, w1o_ref, w1i_ref, b1_ref,
                     w2_ref, b2_ref, w3_ref, b3_ref, v_ref):
    f32 = jnp.float32
    cdt = w1o_ref.dtype              # matmul-operand dtype (bf16 default, f32 opt.)

    # fc1 + relu.  The obs/agent_id concat never materializes: the weight is
    # split and the two partial products are summed.  The f32->cdt cast of the
    # activations happens here on the VMEM tile (no extra HBM pass).
    h = jnp.dot(w1o_ref[...], obsT_ref[...].astype(cdt),
                preferred_element_type=f32)
    h = h + jnp.dot(w1i_ref[...], idT_ref[...].astype(cdt),
                    preferred_element_type=f32)
    h = jnp.maximum(h + b1_ref[...], 0.0)                       # (H, tm) f32

    # fc2 + relu
    h = jnp.dot(w2_ref[...], h.astype(cdt), preferred_element_type=f32)
    h = jnp.maximum(h + b2_ref[...], 0.0)

    # state_value: (1, H) @ (H, tm) -> per-sample scalars land on the LANE
    # axis (lane-dense, unmasked store).
    v = jnp.dot(w3_ref[...], h.astype(cdt), preferred_element_type=f32)
    v_ref[...] = (v + b3_ref[...]).astype(v_ref.dtype)


# ---------------------------------------------------------------------------
# Parameters
# ---------------------------------------------------------------------------
def init_v_critic_params(key, num_state, num_agent, num_hidden):
    """Synthetic parameters with PyTorch nn.Linear layout: w (out, in), b (out,)."""
    din = num_state + num_agent
    shapes = {
        "w1": (num_hidden, din), "b1": (num_hidden,),
        "w2": (num_hidden, num_hidden), "b2": (num_hidden,),
        "w3": (1, num_hidden), "b3": (1,),
    }
    keys = jax.random.split(key, len(shapes))
    return {n: (0.1 * jax.random.normal(k, s)).astype(jnp.float32)
            for (n, s), k in zip(shapes.items(), keys)}


def prepare_v_critic_params(params, num_state, *, compute_dtype=jnp.bfloat16):
    """One-time kernel-layout weight prep, hoisted out of the forward path:
    split fc1 across the obs / agent_id feature groups, reshape biases to
    column vectors, pre-cast matmul operands to compute_dtype.
    NOTE: bf16 operands halve weight/activation bytes; observations with very
    large dynamic range can keep compute_dtype=jnp.float32."""
    H = params["w1"].shape[0]
    f32 = jnp.float32
    return {
        "w1o": params["w1"][:, :num_state].astype(compute_dtype),   # (H, ns)
        "w1i": params["w1"][:, num_state:].astype(compute_dtype),   # (H, na)
        "b1": params["b1"].reshape(H, 1).astype(f32),
        "w2": params["w2"].astype(compute_dtype),                   # (H, H)
        "b2": params["b2"].reshape(H, 1).astype(f32),
        "w3": params["w3"].astype(compute_dtype),                   # (1, H)
        "b3": params["b3"].reshape(1, 1).astype(f32),
    }


# ---------------------------------------------------------------------------
# Tiling helpers
# ---------------------------------------------------------------------------
def _choose_row_tile(M, tm):
    """Pick (tile, grid) for the sample axis (lanes)."""
    if M <= tm:
        return M, 1                       # single block == full array: always legal
    grid = _cdiv(M, tm)
    grid += grid % 2                      # even grid -> both v7x TCs get equal work
    tm_eff = _round_up(_cdiv(M, grid), 128)
    grid = _cdiv(M, tm_eff)               # last block over-covers; no jnp.pad
    return tm_eff, grid


def bucket_rows(M, base=2048):
    """Optional: round a sample count up to a power-of-two bucket.  Pad batches
    to this OUTSIDE the jit to avoid a fresh trace/compile for every distinct
    (batch, T) in training loops with variable shapes."""
    return base if M <= base else 1 << (M - 1).bit_length()


# ---------------------------------------------------------------------------
# Forward
# ---------------------------------------------------------------------------
@functools.partial(jax.jit, static_argnames=("tm",))
def v_critic_v(prepared, obs, agent_id, *, tm=4096):
    """V_critic.v: (obs, agent_id) -> state value, shape (*lead, 1).

    tm is the sample tile on the lane axis; 2048-8192 amortizes per-step
    overhead.  v5e/v6e (128 MiB VMEM) can push 8192-16384; on v7x the VMEM
    estimate below keeps the scoped limit under its 64 MiB physical budget."""
    lead = obs.shape[:-1]
    ns, na = obs.shape[-1], agent_id.shape[-1]
    H = prepared["w2"].shape[0]
    M = math.prod(lead) if lead else 1

    # Feature-major views: features on sublanes, samples on lanes.  This is
    # the only wrapper pass over the activations; they stay f32 (cast in-kernel).
    obsT = obs.reshape(M, ns).T           # (ns, M)
    idT = agent_id.reshape(M, na).T       # (na, M)

    tm_eff, grid = _choose_row_tile(M, tm)

    def full_spec(a):
        # Grid-invariant block: DMA'd once, VMEM-resident for every step.
        # (For very large H, add pipeline_mode=pl.Buffered(1) here to drop the
        #  wasted second weight buffer on v7x's smaller VMEM.)
        return pl.BlockSpec(a.shape, lambda i: (0, 0))

    in_specs = [
        pl.BlockSpec((ns, tm_eff), lambda i: (0, i)),
        pl.BlockSpec((na, tm_eff), lambda i: (0, i)),
        full_spec(prepared["w1o"]), full_spec(prepared["w1i"]),
        full_spec(prepared["b1"]),
        full_spec(prepared["w2"]), full_spec(prepared["b2"]),
        full_spec(prepared["w3"]), full_spec(prepared["b3"]),
    ]
    out_specs = pl.BlockSpec((1, tm_eff), lambda i: (0, i))
    out_shape = jax.ShapeDtypeStruct((1, M), jnp.float32)

    # Explicit VMEM budget: streamed x/out tiles (double-buffered) + live f32
    # (H, tm) intermediates + weights.  Raise the scoped limit only if needed,
    # capped below v7x's 64 MiB physical VMEM.
    w_bytes = sum(math.prod(prepared[k].shape) * prepared[k].dtype.itemsize
                  for k in ("w1o", "w1i", "b1", "w2", "b2", "w3", "b3"))
    est = (2 * (ns + na) * tm_eff * obs.dtype.itemsize     # input double-buffers
           + 2 * tm_eff * 4                                # output double-buffer
           + 4 * H * tm_eff * 4                            # live intermediates (slack)
           + 2 * w_bytes)
    vmem_limit = None
    if est > (32 << 20):
        vmem_limit = min(_round_up(est + (est >> 2), 1 << 20), 60 << 20)

    v_row = pl.pallas_call(
        _v_critic_kernel,
        out_shape=out_shape,
        grid_spec=pltpu.PrefetchScalarGridSpec(
            num_scalar_prefetch=0,
            grid=(grid,),
            in_specs=in_specs,
            out_specs=out_specs,
        ),
        compiler_params=pltpu.CompilerParams(
            dimension_semantics=("parallel",),   # shards sample tiles across TCs (v7x)
            vmem_limit_bytes=vmem_limit,
        ),
    )(obsT, idT, prepared["w1o"], prepared["w1i"], prepared["b1"],
      prepared["w2"], prepared["b2"], prepared["w3"], prepared["b3"])

    return v_row.reshape(lead + (1,))


def v_critic_forward(prepared, x, **kw):
    """V_critic.forward on pre-concatenated x (..., num_state + num_agent)."""
    ns = prepared["w1o"].shape[1]
    return v_critic_v(prepared, x[..., :ns], x[..., ns:], **kw)


# ---------------------------------------------------------------------------
# Pure-JAX reference (mirrors the PyTorch module)
# ---------------------------------------------------------------------------
def _reference_forward(params, x):
    h = jax.nn.relu(x @ params["w1"].T + params["b1"])
    h = jax.nn.relu(h @ params["w2"].T + params["b2"])
    return h @ params["w3"].T + params["b3"]


if __name__ == "__main__":
    num_state, num_agent, num_hidden = 16, 4, 32
    B, T = 2, 8

    key = jax.random.PRNGKey(0)
    k_par, k_obs = jax.random.split(key, 2)
    params = init_v_critic_params(k_par, num_state, num_agent, num_hidden)

    obs = jax.random.normal(k_obs, (B, T, num_state), dtype=jnp.float32)
    agent_ids = jnp.tile(jnp.arange(T) % num_agent, (B, 1))
    one_hot_id = jax.nn.one_hot(agent_ids, num_agent, dtype=jnp.float32)

    # Weight prep hoisted out of the forward path (done once per deployment).
    prep_f32 = prepare_v_critic_params(params, num_state, compute_dtype=jnp.float32)
    prep_bf16 = prepare_v_critic_params(params, num_state)     # default bf16 fast path

    v_f32 = v_critic_v(prep_f32, obs, one_hot_id)              # bit-faithful check path
    v_bf16 = v_critic_v(prep_bf16, obs, one_hot_id)            # v5e/v6e/v7x fast path
    v_fwd = v_critic_forward(prep_f32, jnp.concatenate([obs, one_hot_id], axis=-1))
    jax.block_until_ready((v_f32, v_bf16, v_fwd))

    v_ref = _reference_forward(params, jnp.concatenate([obs, one_hot_id], axis=-1))
    assert v_f32.shape == (B, T, 1), v_f32.shape
    assert jnp.allclose(v_f32, v_ref, atol=1e-4), "f32 path mismatch"
    assert jnp.allclose(v_fwd, v_ref, atol=1e-4), "forward() path mismatch"
    assert jnp.allclose(v_bf16, v_ref, atol=2e-2, rtol=2e-2), "bf16 path mismatch"

    print("KERNEL_OK")
</pallas_src>

<mosaic_0001>
module attributes {stable_mosaic.version = 11 : i64} {
  func.func @_v_critic_kernel(%arg0: i32, %arg1: memref<16x16xf32, #tpu.memory_space<vmem>>, %arg2: memref<4x16xf32, #tpu.memory_space<vmem>>, %arg3: memref<32x16xf32, #tpu.memory_space<vmem>>, %arg4: memref<32x4xf32, #tpu.memory_space<vmem>>, %arg5: memref<32x1xf32, #tpu.memory_space<vmem>>, %arg6: memref<32x32xf32, #tpu.memory_space<vmem>>, %arg7: memref<32x1xf32, #tpu.memory_space<vmem>>, %arg8: memref<1x32xf32, #tpu.memory_space<vmem>>, %arg9: memref<1x1xf32, #tpu.memory_space<vmem>>, %arg10: memref<1x16xf32, #tpu.memory_space<vmem>>) attributes {dimension_semantics = [#tpu.dimension_semantics<parallel>], iteration_bounds = array<i64: 1>, scalar_prefetch = 0 : i64, scratch_operands = 0 : i64, tpu.core_type = #tpu.core_type<tc>, window_params = [{transform_indices = @transform_0, window_bounds = array<i64: 16, 16>}, {transform_indices = @transform_1, window_bounds = array<i64: 4, 16>}, {pipeline_mode = #tpu.pipeline_mode<synchronous>, transform_indices = @transform_2, window_bounds = array<i64: 32, 16>}, {pipeline_mode = #tpu.pipeline_mode<synchronous>, transform_indices = @transform_3, window_bounds = array<i64: 32, 4>}, {pipeline_mode = #tpu.pipeline_mode<synchronous>, transform_indices = @transform_4, window_bounds = array<i64: 32, 1>}, {pipeline_mode = #tpu.pipeline_mode<synchronous>, transform_indices = @transform_5, window_bounds = array<i64: 32, 32>}, {pipeline_mode = #tpu.pipeline_mode<synchronous>, transform_indices = @transform_6, window_bounds = array<i64: 32, 1>}, {pipeline_mode = #tpu.pipeline_mode<synchronous>, transform_indices = @transform_7, window_bounds = array<i64: 1, 32>}, {pipeline_mode = #tpu.pipeline_mode<synchronous>, transform_indices = @transform_8, window_bounds = array<i64: 1, 1>}, {transform_indices = @transform_9, window_bounds = array<i64: 1, 16>}]} {
    %c0 = arith.constant 0 : index
    %c0_0 = arith.constant 0 : index
    %0 = vector.load %arg3[%c0, %c0_0] : memref<32x16xf32, #tpu.memory_space<vmem>>, vector<32x16xf32>
    %c0_1 = arith.constant 0 : index
    %c0_2 = arith.constant 0 : index
    %1 = vector.load %arg1[%c0_1, %c0_2] : memref<16x16xf32, #tpu.memory_space<vmem>>, vector<16x16xf32>
    %cst = arith.constant dense<0.000000e+00> : vector<32x16xf32>
    %2 = tpu.matmul %0, %1, %cst {dimension_numbers = #tpu.dot_dimension_numbers<[1], [0], [0], [1], [0, 0, 1, 1], [], []>} : vector<32x16xf32>, vector<16x16xf32>, vector<32x16xf32> -> vector<32x16xf32>
    %c0_3 = arith.constant 0 : index
    %c0_4 = arith.constant 0 : index
    %3 = vector.load %arg4[%c0_3, %c0_4] : memref<32x4xf32, #tpu.memory_space<vmem>>, vector<32x4xf32>
    %c0_5 = arith.constant 0 : index
    %c0_6 = arith.constant 0 : index
    %4 = vector.load %arg2[%c0_5, %c0_6] : memref<4x16xf32, #tpu.memory_space<vmem>>, vector<4x16xf32>
    %cst_7 = arith.constant dense<0.000000e+00> : vector<32x16xf32>
    %5 = tpu.matmul %3, %4, %cst_7 {dimension_numbers = #tpu.dot_dimension_numbers<[1], [0], [0], [1], [0, 0, 1, 1], [], []>} : vector<32x4xf32>, vector<4x16xf32>, vector<32x16xf32> -> vector<32x16xf32>
    %6 = arith.addf %2, %5 : vector<32x16xf32>
    %c0_8 = arith.constant 0 : index
    %c0_9 = arith.constant 0 : index
    %7 = vector.load %arg5[%c0_8, %c0_9] : memref<32x1xf32, #tpu.memory_space<vmem>>, vector<32x1xf32>
    %8 = vector.broadcast %7 : vector<32x1xf32> to vector<32x16xf32>
    %9 = arith.addf %6, %8 : vector<32x16xf32>
    %cst_10 = arith.constant 0.000000e+00 : f32
    %10 = vector.broadcast %cst_10 : f32 to vector<32x16xf32>
    %11 = arith.maximumf %9, %10 : vector<32x16xf32>
    %c0_11 = arith.constant 0 : index
    %c0_12 = arith.constant 0 : index
    %12 = vector.load %arg6[%c0_11, %c0_12] : memref<32x32xf32, #tpu.memory_space<vmem>>, vector<32x32xf32>
    %cst_13 = arith.constant dense<0.000000e+00> : vector<32x16xf32>
    %13 = tpu.matmul %12, %11, %cst_13 {dimension_numbers = #tpu.dot_dimension_numbers<[1], [0], [0], [1], [0, 0, 1, 1], [], []>} : vector<32x32xf32>, vector<32x16xf32>, vector<32x16xf32> -> vector<32x16xf32>
    %c0_14 = arith.constant 0 : index
    %c0_15 = arith.constant 0 : index
    %14 = vector.load %arg7[%c0_14, %c0_15] : memref<32x1xf32, #tpu.memory_space<vmem>>, vector<32x1xf32>
    %15 = vector.broadcast %14 : vector<32x1xf32> to vector<32x16xf32>
    %16 = arith.addf %13, %15 : vector<32x16xf32>
    %cst_16 = arith.constant 0.000000e+00 : f32
    %17 = vector.broadcast %cst_16 : f32 to vector<32x16xf32>
    %18 = arith.maximumf %16, %17 : vector<32x16xf32>
    %c0_17 = arith.constant 0 : index
    %c0_18 = arith.constant 0 : index
    %19 = vector.load %arg8[%c0_17, %c0_18] : memref<1x32xf32, #tpu.memory_space<vmem>>, vector<1x32xf32>
    %cst_19 = arith.constant dense<0.000000e+00> : vector<1x16xf32>
    %20 = tpu.matmul %19, %18, %cst_19 {dimension_numbers = #tpu.dot_dimension_numbers<[1], [0], [0], [1], [0, 0, 1, 1], [], []>} : vector<1x32xf32>, vector<32x16xf32>, vector<1x16xf32> -> vector<1x16xf32>
    %c0_20 = arith.constant 0 : index
    %c0_21 = arith.constant 0 : index
    %21 = vector.load %arg9[%c0_20, %c0_21] : memref<1x1xf32, #tpu.memory_space<vmem>>, vector<1x1xf32>
    %22 = vector.broadcast %21 : vector<1x1xf32> to vector<1x16xf32>
    %23 = arith.addf %20, %22 : vector<1x16xf32>
    %c0_22 = arith.constant 0 : index
    %c0_23 = arith.constant 0 : index
    %24 = vector.load %arg10[%c0_22, %c0_23] : memref<1x16xf32, #tpu.memory_space<vmem>>, vector<1x16xf32>
    tpu.vector_store %arg10[%c0_22, %c0_23], %23 {strides = array<i32>} : memref<1x16xf32, #tpu.memory_space<vmem>>, vector<1x16xf32>,
    return
  }
  func.func @transform_0(%arg0: i32) -> (i32, i32) {
    %c0_i32 = arith.constant 0 : i32
    %c0_i32_0 = arith.constant 0 : i32
    return %c0_i32, %arg0 : i32, i32
  }
  func.func @transform_1(%arg0: i32) -> (i32, i32) {
    %c0_i32 = arith.constant 0 : i32
    %c0_i32_0 = arith.constant 0 : i32
    return %c0_i32, %arg0 : i32, i32
  }
  func.func @transform_2(%arg0: i32) -> (i32, i32) {
    %c0_i32 = arith.constant 0 : i32
    %c0_i32_0 = arith.constant 0 : i32
    %c0_i32_1 = arith.constant 0 : i32
    return %c0_i32, %c0_i32_0 : i32, i32
  }
  func.func @transform_3(%arg0: i32) -> (i32, i32) {
    %c0_i32 = arith.constant 0 : i32
    %c0_i32_0 = arith.constant 0 : i32
    %c0_i32_1 = arith.constant 0 : i32
    return %c0_i32, %c0_i32_0 : i32, i32
  }
  func.func @transform_4(%arg0: i32) -> (i32, i32) {
    %c0_i32 = arith.constant 0 : i32
    %c0_i32_0 = arith.constant 0 : i32
    %c0_i32_1 = arith.constant 0 : i32
    return %c0_i32, %c0_i32_0 : i32, i32
  }
  func.func @transform_5(%arg0: i32) -> (i32, i32) {
    %c0_i32 = arith.constant 0 : i32
    %c0_i32_0 = arith.constant 0 : i32
    %c0_i32_1 = arith.constant 0 : i32
    return %c0_i32, %c0_i32_0 : i32, i32
  }
  func.func @transform_6(%arg0: i32) -> (i32, i32) {
    %c0_i32 = arith.constant 0 : i32
    %c0_i32_0 = arith.constant 0 : i32
    %c0_i32_1 = arith.constant 0 : i32
    return %c0_i32, %c0_i32_0 : i32, i32
  }
  func.func @transform_7(%arg0: i32) -> (i32, i32) {
    %c0_i32 = arith.constant 0 : i32
    %c0_i32_0 = arith.constant 0 : i32
    %c0_i32_1 = arith.constant 0 : i32
    return %c0_i32, %c0_i32_0 : i32, i32
  }
  func.func @transform_8(%arg0: i32) -> (i32, i32) {
    %c0_i32 = arith.constant 0 : i32
    %c0_i32_0 = arith.constant 0 : i32
    %c0_i32_1 = arith.constant 0 : i32
    return %c0_i32, %c0_i32_0 : i32, i32
  }
  func.func @transform_9(%arg0: i32) -> (i32, i32) {
    %c0_i32 = arith.constant 0 : i32
    %c0_i32_0 = arith.constant 0 : i32
    return %c0_i32, %arg0 : i32, i32
  }
}

</mosaic_0001>

<bundles_post_ra>
// kernel: v_critic_v.1
= control target key start
LH: loop header
LB: loop body
LE: loop exit
PB: predicated region body
PF: predicated region fallthrough
CT: control target
= control target key end

     0   :  { %vm58_vm0 = vcmask 1043456   ;;  %vm45_vm1 = vcmask 31744   ;;  %v606_v3 = vmov 0   ;;  %vm147_vm2 = vcmask 130048   ;;  %s753_s1 = inlined_call_operand.vmem [shape: f32[4,16], index: 1, kind: input, shape index: {}]   ;;  %s754_s3 = inlined_call_operand.vmem [shape: f32[32,4], index: 3, kind: input, shape index: {}]   ;;  %s755_s0 = inlined_call_operand.vmem [shape: f32[16,16], index: 0, kind: input, shape index: {}]   ;;  %s756_s8 = inlined_call_operand.<no memory space> [shape: f32[1,1], index: 8, kind: input, shape index: {}]   ;;  %s757_s4 = inlined_call_operand.vmem [shape: f32[32,1], index: 4, kind: input, shape index: {}]   ;;  %s758_s2 = inlined_call_operand.vmem [shape: f32[32,16], index: 2, kind: input, shape index: {}]   ;;  %s759_s6 = inlined_call_operand.vmem [shape: f32[32,1], index: 6, kind: input, shape index: {}]   ;;  %s760_s5 = inlined_call_operand.vmem [shape: f32[32,32], index: 5, kind: input, shape index: {}]   ;;  %s761_s7 = inlined_call_operand.vmem [shape: f32[1,32], index: 7, kind: input, shape index: {}]   ;;  %s762_s9 = inlined_call_operand.vmem [shape: f32[1,16], index: 9, kind: output, shape index: {}]  }
   0x1   :  { %v44_v0 = vld [vmem:[%s753_s1] sm:$0xf]  ;;  %v41_v2 = vld [vmem:[%s754_s3 + $0x8] sm:$0xff]  ;;  %604 = vset.pattern.permute.xlu0 %v606_v3  ;;  %605 = vset.pattern.permute.xlu1 %v606_v3  ;;  %v14_v4 = vstv %s756_s8  ;;  %v42_v7 = vld [vmem:[%s754_s3 + $0x10] sm:$0xff]  ;;  %vm305_vm3 = vcmask 261120   ;;  %v607_v45 = vmov 0.0|0.0  }
   0x2   :  { %v40_v1 = vld [vmem:[%s754_s3] sm:$0xff]  ;;  %535 = vmatprep.subr.msk.mxu0 %vm58_vm0, %v44_v0  ;;  %v39_v6 = vld [vmem:[%s755_s0 + $0x8] sm:$0xff]  ;;  %15 = vst [vmem:[#allocation2] sm:$0x1] %v14_v4  ;;  %v43_v10 = vld [vmem:[%s754_s3 + $0x18] sm:$0xff]  ;;  %vm608_vm4 = vmmov 0  }
   0x3   :  { %537 = vmatprep.mubr.msk.f32.mxu0 %vm45_vm1, %v40_v1  ;;  %v38_v5 = vld [vmem:[%s755_s0] sm:$0xff]  ;;  %536 = vmatpush3.msk.msra.mxu0 %vm58_vm0, %v44_v0  ;;  %v247_v11 = vld [vmem:[%s757_s4 + $0x10] sm:$0xff]  ;;  %v246_v13 = vld [vmem:[%s757_s4 + $0x8] sm:$0xff]  ;;  %v609_v46 = vmov 0.0   ;;  %vm491_vm5 = vcmask 122880  }
   0x4   :  { %v578_v8 = vpack.c.bf16 %v39_v6, %v38_v5  ;;  %538 = vmatmul.mubr.msk.f32.vlgmr.msra.gmra.mrb[0].mxu0 %vm45_vm1, %v41_v2  ;;  %v245_v9 = vld [vmem:[%s757_s4] sm:$0xff]  ;;  %261 = vperm.xlu1 %605, %v247_v11   ;;  %v248_v14 = vld [vmem:[%s757_s4 + $0x18] sm:$0xff]  ;;  %v35_v15 = vld [vmem:[%s758_s2 + $0x8] sm:$0xff]  ;;  %v414_v2 = vlaneseq }
   0x5   :  { %540 = vmatprep.mubr.msk.f32.mxu0 %vm45_vm1, %v42_v7  ;;  %v34_v12 = vld [vmem:[%s758_s2] sm:$0xff]  ;;  %251 = vperm.xlu0 %604, %v245_v9   ;;  %v36_v16 = vld [vmem:[%s758_s2 + $0x10] sm:$0xff]  ;;  %v282_v18 = vld [vmem:[%s759_s6 + $0x8] sm:$0xff] }
   0x6   :  { %579 = vmatprep.subr.bf16.mxu0 %v578_v8  ;;  %v281_v17 = vld [vmem:[%s759_s6] sm:$0xff]  ;;  %v37_v19 = vld [vmem:[%s758_s2 + $0x18] sm:$0xff]  ;;  %v283_v20 = vld [vmem:[%s759_s6 + $0x10] sm:$0xff]  ;;  %v415_v3 = vshrl.u32 %v414_v2, 7 }
   0x7   :  { %581 = vmatpush3.bf16.msra.mxu0 %v578_v8  ;;  %v284_v21 = vld [vmem:[%s759_s6 + $0x18] sm:$0xff]  ;;  %v277_v23 = vld [vmem:[%s760_s5] sm:$0xff]  ;;  %v278_v42 = vld [vmem:[%s760_s5 + $0x8] sm:$0xff] }
   0x8   :  { %541 = vmatmul.mubr.msk.f32.gmra.mrb[2].mxu0 %vm45_vm1, %v43_v10  ;;  %266 = vperm.xlu1 %605, %v248_v14   ;;  %v279_v43 = vld [vmem:[%s760_s5 + $0x10] sm:$0xff]  ;;  %v280_v44 = vld [vmem:[%s760_s5 + $0x18] sm:$0xff]  ;;  %v407_v1 = vld [vmem:[%s761_s7] sm:$0x1]  ;;  %v416_v4 = vsub.s32 0, %v415_v3 }
   0x9   :  { %547 = vmatprep.mubr.msk.f32.mxu0 %vm147_vm2, %v34_v12  ;;  %256 = vperm.xlu0 %604, %v246_v13   ;;  %v408_v22 = vld [vmem:[#allocation2] sm:$0x1] }
   0xa   :  { %561 = vmatprep.mubr.msk.f32.mxu1 %vm305_vm3, %v277_v23 }
   0xc   :  { %548 = vmatmul.mubr.msk.f32.vlgmr.msra.gmra.mrb[0].mxu0 %vm147_vm2, %v35_v15  ;;  %292 = vperm.xlu1 %605, %v282_v18  }
   0xd   :  { %550 = vmatprep.mubr.msk.f32.mxu0 %vm147_vm2, %v36_v16  ;;  %287 = vperm.xlu0 %604, %v281_v17  }
  0x10   :  { %551 = vmatmul.mubr.msk.f32.gmra.mrb[2].mxu0 %vm147_vm2, %v37_v19  ;;  %302 = vperm.xlu1 %605, %v284_v21  }
  0x11   :  { %297 = vperm.xlu0 %604, %v283_v20  }
  0x15   :  { %411 = vperm.xlu0 %604, %v408_v22  }
  0x83   :  { %v262_v25 = vpop.permute.xlu1 %261 }
  0x84   :  { %v252_v24 = vpop.permute.xlu0 %251 }
  0x87   :  { %v267_v32 = vpop.permute.xlu1 %266 }
  0x88   :  { %v257_v26 = vpop.permute.xlu0 %256 }
  0x8b   :  { %v293_v47 = vpop.permute.xlu1 %292 }
  0x8c   :  { %v288_v48 = vpop.permute.xlu0 %287 }
  0x8f   :  { %v303_v54 = vpop.permute.xlu1 %302 }
  0x90   :  { %v298_v57 = vpop.permute.xlu0 %297 }
  0x94   :  { %v412_v5 = vpop.permute.xlu0 %411 }
  0x95   :  { %v417_v6 = vrot.slane %v412_v5, %v416_v4 }
  0xdf   :  { %v549_v27 = vpop.f32.mrb[0].mxu0 }
  0xe0   :  { %v270_v28 = vadd.f32 %v549_v27, %v257_v26  ;;  %v226_v29 = vpop.f32.mrb[1].mxu0 }
  0xe1   :  { %v269_v30 = vadd.f32 %v252_v24, %v226_v29 }
  0xe2   :  { %v274_v31 = vmax.f32 %v270_v28, 0.0 }
  0xe3   :  { %v273_v33 = vmax.f32 %v269_v30, 0.0  ;;  %v552_v34 = vpop.f32.mrb[2].mxu0 }
  0xe4   :  { %v272_v35 = vadd.f32 %v552_v34, %v267_v32  ;;  %v236_v36 = vpop.f32.mrb[3].mxu0 }
  0xe5   :  { %v271_v37 = vadd.f32 %v262_v25, %v236_v36  ;;  %v582_v38 = vpack.c.bf16 %v274_v31, %v273_v33 }
  0xe6   :  { %v276_v39 = vmax.f32 %v272_v35, 0.0 }
  0xe7   :  { %v275_v40 = vmax.f32 %v271_v37, 0.0  ;;  %583 = vmatprep.subr.bf16.mxu1 %v582_v38 }
  0xe8   :  { %585 = vmatpush3.bf16.msra.mxu1 %v582_v38 }
  0xe9   :  { %v586_v41 = vpack.c.bf16 %v276_v39, %v275_v40 }
  0xeb   :  { %587 = vmatprep.subr.bf16.mxu1 %v586_v41 }
  0xec   :  { %589 = vmatpush3.bf16.msra.mxu1 %v586_v41 }
  0xed   :  { %590 = vmatprep.subr.bf16.mxu1 %v607_v45 }
  0xef   :  { %562 = vmatmul.mubr.msk.f32.vlgmr.msra.gmra.mrb[0].mxu1 %vm305_vm3, %v278_v42 }
  0xf0   :  { %564 = vmatprep.mubr.msk.f32.mxu1 %vm305_vm3, %v279_v43 }
  0xf3   :  { %565 = vmatmul.mubr.msk.f32.gmra.mrb[2].mxu1 %vm305_vm3, %v280_v44 }
  0xf4   :  { %575 = vmatprep.mubr.msk.f32.mxu1 %vm608_vm4, %v609_v46 }
 0x1c2   :  { %v563_v49 = vpop.f32.mrb[0].mxu1 }
 0x1c3   :  { %v390_v50 = vadd.f32 %v563_v49, %v293_v47  ;;  %v384_v51 = vpop.f32.mrb[1].mxu1 }
 0x1c4   :  { %v385_v52 = vadd.f32 %v384_v51, %v288_v48 }
 0x1c5   :  { %v404_v53 = vmax.f32 %v390_v50, 0.0 }
 0x1c6   :  { %v403_v55 = vmax.f32 %v385_v52, 0.0  ;;  %v566_v56 = vpop.f32.mrb[2].mxu1 }
 0x1c7   :  { %v400_v58 = vadd.f32 %v566_v56, %v303_v54  ;;  %v394_v59 = vpop.f32.mrb[3].mxu1 }
 0x1c8   :  { %v591_v60 = vpack.c.bf16 %v404_v53, %v403_v55  ;;  %v395_v61 = vadd.f32 %v394_v59, %v298_v57 }
 0x1c9   :  { %v406_v62 = vmax.f32 %v400_v58, 0.0 }
 0x1ca   :  { %v405_v63 = vmax.f32 %v395_v61, 0.0  ;;  %592 = vmatpush3.bf16.msra.mxu1 %v591_v60 }
 0x1cb   :  { %593 = vmatprep.subr.bf16.mxu1 %v607_v45 }
 0x1cc   :  { %v594_v0 = vpack.c.bf16 %v406_v62, %v405_v63 }
 0x1ce   :  { %595 = vmatpush3.bf16.msra.mxu1 %v594_v0 }
 0x1d1   :  { %576 = vmatmul.mubr.msk.f32.vlgmr.msra.gmra.mrb[4].mxu1 %vm305_vm3, %v407_v1 }
 0x2a4   :  { %v487_v7 = vpop.f32.mrb[4].mxu1 }
 0x2a5   :  { %v488_v8 = vadd.f32 %v487_v7, %v417_v6  ;;  %v577_v9 = vpop.f32.mrb[5].mxu1 }
 0x2a7   :  { %492 = vst.msk [vmem:[%s762_s9] sm:$0x1] %vm491_vm5, %v488_v8 }

</bundles_post_ra>
